<compile_context>
chip_gen: v6e
topology: v6e:2x2x1
jax: 0.10.0
libtpu: 0.0.40
codegen_flags: <defaults>
</compile_context>

<pallas_src>
import functools

import jax
import jax.numpy as jnp
import numpy as np
from jax.experimental import pallas as pl
from jax.experimental.pallas import tpu as pltpu

KSIZE = 3
ERO1, DIL1, DIL2, ERO2 = 0, 1, 2, 3              # order of the stacked 3x3 SE weights
OFFS = [(kh - 1, kw - 1) for kh in range(KSIZE) for kw in range(KSIZE)]


def _pick_batch_tile(B, C, S, target_bytes=1 << 20, max_rows=32):
    """Images per grid step.

    Prefers a multiple of 8 (full sublane fill of the (bt, S) compute arrays) and never
    degenerates below min(B, 8); batches that do not divide evenly are handled by padding
    B in the wrapper, not by shrinking the tile.  max_rows=32 keeps the live set
    (y, neg_e1, d2, accumulator, temp ~ 5 * bt/4 vregs) inside the 64-vreg file.
    """
    per_image = 4 * (C + 4) * S                    # f32 bytes in + out per image
    bt = max(1, min(B, max_rows, target_bytes // max(per_image, 1)))
    if bt >= 8:
        bt -= bt % 8                               # sublane-aligned tile
    elif bt < B:
        bt = min(8, B)                             # keep block dim legal (mult of 8 or == B)
    return bt


def _shift_masks(H, W):
    """(9, H*W) f32 constant: masks[k, h*W+w] = 1 iff pixel (h, w) shifted by OFFS[k]
    stays inside the image (zero-padding semantics of the unfold-based morphology)."""
    hh, ww = np.meshgrid(np.arange(H), np.arange(W), indexing="ij")
    m = np.zeros((KSIZE * KSIZE, H * W), np.float32)
    for k, (dh, dw) in enumerate(OFFS):
        ok = (hh + dh >= 0) & (hh + dh < H) & (ww + dw >= 0) & (ww + dw < W)
        m[k] = ok.reshape(-1).astype(np.float32)
    return jnp.asarray(m)


def _kernel(convw_ref, morphw_ref, masks_ref, x_ref, out_ref, *, C, S, W):
    # convw_ref : SMEM (C+1,)   -> [w_0..w_{C-1}, bias]
    # morphw_ref: SMEM (36,)    -> [ero1 | dil1 | dil2 | ero2] 3x3 weights, row-major
    # masks_ref : VMEM (9, S)   -> boundary masks, resident across grid steps
    # x_ref     : VMEM (bt, C*S)   lane-dense, channel-major
    # out_ref   : VMEM (bt, 4*S)   lane-dense, channel-major

    # ---- 1x1 conv + ReLU (VPU MACs; C is tiny, the MXU would be ~0% utilized) ----
    y = x_ref[:, 0:S] * convw_ref[0] + convw_ref[C]          # bias folded into first MAC
    for c in range(1, C):
        y = y + x_ref[:, c * S:(c + 1) * S] * convw_ref[c]
    y = jnp.maximum(y, 0.0)

    def shift(img, k):
        # value at spatial offset OFFS[k], zero outside the image.
        # In the flattened layout a (dh, dw) shift is a single lane roll by dh*W + dw.
        dh, dw = OFFS[k]
        s = dh * W + dw
        if s == 0:
            return img
        r = pltpu.roll(img, shift=(-s) % S, axis=1)
        return r * masks_ref[k:k + 1, :]                      # (1,S) mask broadcast in-op

    # ---- stage 1: erosion_1(y) and dilation_2(y) share every shifted image ----
    neg_e1 = None   # accumulates max_k(w_ero1 - shifted)  -> erosion_1 = -neg_e1 (not materialized)
    d2 = None       # accumulates max_k(shifted + w_dil2)  -> dilation_2
    for k in range(KSIZE * KSIZE):
        sh = shift(y, k)
        te = morphw_ref[ERO1 * 9 + k] - sh
        td = sh + morphw_ref[DIL2 * 9 + k]
        neg_e1 = te if neg_e1 is None else jnp.maximum(neg_e1, te)
        d2 = td if d2 is None else jnp.maximum(d2, td)

    # ---- stage 2 ----
    # opening = dilation_1(-neg_e1) = max_k(w_dil1[k] - shift_k(neg_e1))   (negate folded)
    xop = None
    for k in range(KSIZE * KSIZE):
        t = morphw_ref[DIL1 * 9 + k] - shift(neg_e1, k)
        xop = t if xop is None else jnp.maximum(xop, t)

    # closing = erosion_2(d2) = -max_k(w_ero2[k] - shift_k(d2))
    neg_cl = None
    for k in range(KSIZE * KSIZE):
        t = morphw_ref[ERO2 * 9 + k] - shift(d2, k)
        neg_cl = t if neg_cl is None else jnp.maximum(neg_cl, t)
    xcl = -neg_cl

    # S-wide, 128-aligned lane-slice stores (unmasked full-width vst)
    out_ref[:, 0 * S:1 * S] = y - xop     # top-hat
    out_ref[:, 1 * S:2 * S] = xcl - y     # black-hat
    out_ref[:, 2 * S:3 * S] = xop         # opening
    out_ref[:, 3 * S:4 * S] = xcl         # closing


def morphnet_forward(x, conv_w, conv_b, morph_w):
    """x: (B,C,H,W) f32; conv_w: (C,); conv_b: (1,); morph_w: (4,3,3)."""
    B, C, H, W = x.shape
    S = H * W
    bt = _pick_batch_tile(B, C, S)
    Bp = ((B + bt - 1) // bt) * bt                 # pad batch instead of shrinking the tile
    grid_steps = Bp // bt

    x_flat = x.reshape(B, C * S).astype(jnp.float32)
    if Bp != B:
        x_flat = jnp.pad(x_flat, ((0, Bp - B), (0, 0)))

    convw = jnp.concatenate([conv_w.reshape(-1), conv_b.reshape(-1)]).astype(jnp.float32)
    morphw = morph_w.reshape(4 * KSIZE * KSIZE).astype(jnp.float32)   # 1-D: tiny SMEM footprint
    masks = _shift_masks(H, W)

    x_spec_kwargs = {}
    if grid_steps >= 3:
        # deeper input buffering for the HBM-bandwidth-bound regime (v5e)
        x_spec_kwargs["pipeline_mode"] = pl.Buffered(3)

    kernel = functools.partial(_kernel, C=C, S=S, W=W)

    # TODO(synk): for very large images (when a whole (bt, C*S) block no longer fits the
    # scoped VMEM budget — size the trigger from v7x's 32 MiB scoped / 64 MiB physical, not
    # v5e/v6e's 128 MiB) add an H-tiling grid axis with a 2-row halo via index_map overlap.
    out = pl.pallas_call(
        kernel,
        out_shape=jax.ShapeDtypeStruct((Bp, 4 * S), jnp.float32),
        grid_spec=pltpu.PrefetchScalarGridSpec(
            num_scalar_prefetch=0,
            grid=(grid_steps,),
            in_specs=[
                pl.BlockSpec(memory_space=pltpu.MemorySpace.SMEM),     # conv w + bias
                pl.BlockSpec(memory_space=pltpu.MemorySpace.SMEM),     # 4 x 3x3 SE weights
                pl.BlockSpec((KSIZE * KSIZE, S), lambda b: (0, 0)),    # boundary masks, resident
                pl.BlockSpec((bt, C * S), lambda b: (b, 0), **x_spec_kwargs),
            ],
            out_specs=pl.BlockSpec((bt, 4 * S), lambda b: (b, 0)),
        ),
        compiler_params=pltpu.CompilerParams(
            dimension_semantics=("parallel",),       # batch-tile axis; shards across TCs on v7x
            vmem_limit_bytes=32 * 1024 * 1024,       # ample for these block sizes on v5e/v6e/v7x
        ),
        cost_estimate=pl.CostEstimate(
            flops=110 * Bp * S,                      # ~108 elementwise ops per pixel
            transcendentals=0,
            bytes_accessed=4 * Bp * (C + 4) * S,
        ),
    )(convw, morphw, masks, x_flat)

    return out[:B].reshape(B, 4, H, W)


# ---------------------------------------------------------------------------
# Pure-JAX reference (mirrors the PyTorch unfold-based Erosion2d/Dilation2d)
# ---------------------------------------------------------------------------
def _ref_forward(x, conv_w, conv_b, morph_w):
    B, C, H, W = x.shape
    y = jax.nn.relu(jnp.einsum("bchw,c->bhw", x, conv_w) + conv_b[0])

    def dilate(img, w):
        p = jnp.pad(img, ((0, 0), (1, 1), (1, 1)))
        terms = [p[:, kh:kh + H, kw:kw + W] + w[kh, kw]
                 for kh in range(KSIZE) for kw in range(KSIZE)]
        return jnp.max(jnp.stack(terms), axis=0)

    def erode(img, w):
        p = jnp.pad(img, ((0, 0), (1, 1), (1, 1)))
        terms = [w[kh, kw] - p[:, kh:kh + H, kw:kw + W]
                 for kh in range(KSIZE) for kw in range(KSIZE)]
        return -jnp.max(jnp.stack(terms), axis=0)

    xop = dilate(erode(y, morph_w[ERO1]), morph_w[DIL1])
    xcl = erode(dilate(y, morph_w[DIL2]), morph_w[ERO2])
    return jnp.stack([y - xop, xcl - y, xop, xcl], axis=1)


if __name__ == "__main__":
    B, C, H, W = 2, 4, 16, 16  # inchannel = 4

    key = jax.random.PRNGKey(0)
    kx, kw, kb, km = jax.random.split(key, 4)

    x = jax.random.normal(kx, (B, C, H, W), dtype=jnp.float32)

    # conv1: Conv2d(C, 1, kernel=1) -> weight (1,C,1,1) flattened to (C,), bias (1,)
    bound = 1.0 / np.sqrt(C)
    conv_w = jax.random.uniform(kw, (C,), jnp.float32, -bound, bound)
    conv_b = jax.random.uniform(kb, (1,), jnp.float32, -bound, bound)

    # PyTorch inits the SE weights to zeros; use small random values for a stronger check
    # (forward semantics are weight-agnostic).
    morph_w = 0.1 * jax.random.normal(km, (4, KSIZE, KSIZE), dtype=jnp.float32)

    out = jax.block_until_ready(morphnet_forward(x, conv_w, conv_b, morph_w))
    ref = jax.block_until_ready(_ref_forward(x, conv_w, conv_b, morph_w))

    assert out.shape == (B, 4, H, W)
    np.testing.assert_allclose(np.asarray(out), np.asarray(ref), atol=1e-5, rtol=1e-5)
    print("KERNEL_OK")
</pallas_src>

<mosaic_0001>
module attributes {stable_mosaic.version = 11 : i64} {
  func.func @_kernel(%arg0: i32, %arg1: memref<5xf32, #tpu.memory_space<smem>>, %arg2: memref<36xf32, #tpu.memory_space<smem>>, %arg3: memref<9x256xf32, #tpu.memory_space<vmem>>, %arg4: memref<2x1024xf32, #tpu.memory_space<vmem>>, %arg5: memref<2x1024xf32, #tpu.memory_space<vmem>>) attributes {dimension_semantics = [#tpu.dimension_semantics<parallel>], iteration_bounds = array<i64: 1>, scalar_prefetch = 0 : i64, scratch_operands = 0 : i64, tpu.core_type = #tpu.core_type<tc>, window_params = [{transform_indices = @transform_0, window_bounds = array<i64: 5>}, {transform_indices = @transform_1, window_bounds = array<i64: 36>}, {pipeline_mode = #tpu.pipeline_mode<synchronous>, transform_indices = @transform_2, window_bounds = array<i64: 9, 256>}, {transform_indices = @transform_3, window_bounds = array<i64: 2, 1024>}, {transform_indices = @transform_4, window_bounds = array<i64: 2, 1024>}]} {
    %c0 = arith.constant 0 : index
    %c0_0 = arith.constant 0 : index
    %0 = vector.load %arg4[%c0, %c0_0] : memref<2x1024xf32, #tpu.memory_space<vmem>>, vector<2x256xf32>
    %c0_1 = arith.constant 0 : index
    %1 = memref.load %arg1[%c0_1] : memref<5xf32, #tpu.memory_space<smem>>
    %2 = vector.broadcast %1 : f32 to vector<2x256xf32>
    %3 = arith.mulf %0, %2 : vector<2x256xf32>
    %c4 = arith.constant 4 : index
    %4 = memref.load %arg1[%c4] : memref<5xf32, #tpu.memory_space<smem>>
    %5 = vector.broadcast %4 : f32 to vector<2x256xf32>
    %6 = arith.addf %3, %5 : vector<2x256xf32>
    %c0_2 = arith.constant 0 : index
    %c256 = arith.constant 256 : index
    %7 = vector.load %arg4[%c0_2, %c256] : memref<2x1024xf32, #tpu.memory_space<vmem>>, vector<2x256xf32>
    %c1 = arith.constant 1 : index
    %8 = memref.load %arg1[%c1] : memref<5xf32, #tpu.memory_space<smem>>
    %9 = vector.broadcast %8 : f32 to vector<2x256xf32>
    %10 = arith.mulf %7, %9 : vector<2x256xf32>
    %11 = arith.addf %6, %10 : vector<2x256xf32>
    %c0_3 = arith.constant 0 : index
    %c512 = arith.constant 512 : index
    %12 = vector.load %arg4[%c0_3, %c512] : memref<2x1024xf32, #tpu.memory_space<vmem>>, vector<2x256xf32>
    %c2 = arith.constant 2 : index
    %13 = memref.load %arg1[%c2] : memref<5xf32, #tpu.memory_space<smem>>
    %14 = vector.broadcast %13 : f32 to vector<2x256xf32>
    %15 = arith.mulf %12, %14 : vector<2x256xf32>
    %16 = arith.addf %11, %15 : vector<2x256xf32>
    %c0_4 = arith.constant 0 : index
    %c768 = arith.constant 768 : index
    %17 = vector.load %arg4[%c0_4, %c768] : memref<2x1024xf32, #tpu.memory_space<vmem>>, vector<2x256xf32>
    %c3 = arith.constant 3 : index
    %18 = memref.load %arg1[%c3] : memref<5xf32, #tpu.memory_space<smem>>
    %19 = vector.broadcast %18 : f32 to vector<2x256xf32>
    %20 = arith.mulf %17, %19 : vector<2x256xf32>
    %21 = arith.addf %16, %20 : vector<2x256xf32>
    %cst = arith.constant 0.000000e+00 : f32
    %22 = vector.broadcast %cst : f32 to vector<2x256xf32>
    %23 = arith.maximumf %21, %22 : vector<2x256xf32>
    %c17_i32 = arith.constant 17 : i32
    %24 = tpu.dynamic_rotate %23 by %c17_i32 dim 1 : vector<2x256xf32>, i32 -> vector<2x256xf32>
    %c0_5 = arith.constant 0 : index
    %c0_6 = arith.constant 0 : index
    %25 = vector.load %arg3[%c0_5, %c0_6] : memref<9x256xf32, #tpu.memory_space<vmem>>, vector<1x256xf32>
    %26 = vector.broadcast %25 : vector<1x256xf32> to vector<2x256xf32>
    %27 = arith.mulf %24, %26 : vector<2x256xf32>
    %c0_7 = arith.constant 0 : index
    %28 = memref.load %arg2[%c0_7] : memref<36xf32, #tpu.memory_space<smem>>
    %29 = vector.broadcast %28 : f32 to vector<2x256xf32>
    %30 = arith.subf %29, %27 : vector<2x256xf32>
    %c18 = arith.constant 18 : index
    %31 = memref.load %arg2[%c18] : memref<36xf32, #tpu.memory_space<smem>>
    %32 = vector.broadcast %31 : f32 to vector<2x256xf32>
    %33 = arith.addf %27, %32 : vector<2x256xf32>
    %c16_i32 = arith.constant 16 : i32
    %34 = tpu.dynamic_rotate %23 by %c16_i32 dim 1 : vector<2x256xf32>, i32 -> vector<2x256xf32>
    %c1_8 = arith.constant 1 : index
    %c0_9 = arith.constant 0 : index
    %35 = vector.load %arg3[%c1_8, %c0_9] : memref<9x256xf32, #tpu.memory_space<vmem>>, vector<1x256xf32>
    %36 = vector.broadcast %35 : vector<1x256xf32> to vector<2x256xf32>
    %37 = arith.mulf %34, %36 : vector<2x256xf32>
    %c1_10 = arith.constant 1 : index
    %38 = memref.load %arg2[%c1_10] : memref<36xf32, #tpu.memory_space<smem>>
    %39 = vector.broadcast %38 : f32 to vector<2x256xf32>
    %40 = arith.subf %39, %37 : vector<2x256xf32>
    %c19 = arith.constant 19 : index
    %41 = memref.load %arg2[%c19] : memref<36xf32, #tpu.memory_space<smem>>
    %42 = vector.broadcast %41 : f32 to vector<2x256xf32>
    %43 = arith.addf %37, %42 : vector<2x256xf32>
    %44 = arith.maximumf %30, %40 : vector<2x256xf32>
    %45 = arith.maximumf %33, %43 : vector<2x256xf32>
    %c15_i32 = arith.constant 15 : i32
    %46 = tpu.dynamic_rotate %23 by %c15_i32 dim 1 : vector<2x256xf32>, i32 -> vector<2x256xf32>
    %c2_11 = arith.constant 2 : index
    %c0_12 = arith.constant 0 : index
    %47 = vector.load %arg3[%c2_11, %c0_12] : memref<9x256xf32, #tpu.memory_space<vmem>>, vector<1x256xf32>
    %48 = vector.broadcast %47 : vector<1x256xf32> to vector<2x256xf32>
    %49 = arith.mulf %46, %48 : vector<2x256xf32>
    %c2_13 = arith.constant 2 : index
    %50 = memref.load %arg2[%c2_13] : memref<36xf32, #tpu.memory_space<smem>>
    %51 = vector.broadcast %50 : f32 to vector<2x256xf32>
    %52 = arith.subf %51, %49 : vector<2x256xf32>
    %c20 = arith.constant 20 : index
    %53 = memref.load %arg2[%c20] : memref<36xf32, #tpu.memory_space<smem>>
    %54 = vector.broadcast %53 : f32 to vector<2x256xf32>
    %55 = arith.addf %49, %54 : vector<2x256xf32>
    %56 = arith.maximumf %44, %52 : vector<2x256xf32>
    %57 = arith.maximumf %45, %55 : vector<2x256xf32>
    %c1_i32 = arith.constant 1 : i32
    %58 = tpu.dynamic_rotate %23 by %c1_i32 dim 1 : vector<2x256xf32>, i32 -> vector<2x256xf32>
    %c3_14 = arith.constant 3 : index
    %c0_15 = arith.constant 0 : index
    %59 = vector.load %arg3[%c3_14, %c0_15] : memref<9x256xf32, #tpu.memory_space<vmem>>, vector<1x256xf32>
    %60 = vector.broadcast %59 : vector<1x256xf32> to vector<2x256xf32>
    %61 = arith.mulf %58, %60 : vector<2x256xf32>
    %c3_16 = arith.constant 3 : index
    %62 = memref.load %arg2[%c3_16] : memref<36xf32, #tpu.memory_space<smem>>
    %63 = vector.broadcast %62 : f32 to vector<2x256xf32>
    %64 = arith.subf %63, %61 : vector<2x256xf32>
    %c21 = arith.constant 21 : index
    %65 = memref.load %arg2[%c21] : memref<36xf32, #tpu.memory_space<smem>>
    %66 = vector.broadcast %65 : f32 to vector<2x256xf32>
    %67 = arith.addf %61, %66 : vector<2x256xf32>
    %68 = arith.maximumf %56, %64 : vector<2x256xf32>
    %69 = arith.maximumf %57, %67 : vector<2x256xf32>
    %c4_17 = arith.constant 4 : index
    %70 = memref.load %arg2[%c4_17] : memref<36xf32, #tpu.memory_space<smem>>
    %71 = vector.broadcast %70 : f32 to vector<2x256xf32>
    %72 = arith.subf %71, %23 : vector<2x256xf32>
    %c22 = arith.constant 22 : index
    %73 = memref.load %arg2[%c22] : memref<36xf32, #tpu.memory_space<smem>>
    %74 = vector.broadcast %73 : f32 to vector<2x256xf32>
    %75 = arith.addf %23, %74 : vector<2x256xf32>
    %76 = arith.maximumf %68, %72 : vector<2x256xf32>
    %77 = arith.maximumf %69, %75 : vector<2x256xf32>
    %c255_i32 = arith.constant 255 : i32
    %78 = tpu.dynamic_rotate %23 by %c255_i32 dim 1 : vector<2x256xf32>, i32 -> vector<2x256xf32>
    %c5 = arith.constant 5 : index
    %c0_18 = arith.constant 0 : index
    %79 = vector.load %arg3[%c5, %c0_18] : memref<9x256xf32, #tpu.memory_space<vmem>>, vector<1x256xf32>
    %80 = vector.broadcast %79 : vector<1x256xf32> to vector<2x256xf32>
    %81 = arith.mulf %78, %80 : vector<2x256xf32>
    %c5_19 = arith.constant 5 : index
    %82 = memref.load %arg2[%c5_19] : memref<36xf32, #tpu.memory_space<smem>>
    %83 = vector.broadcast %82 : f32 to vector<2x256xf32>
    %84 = arith.subf %83, %81 : vector<2x256xf32>
    %c23 = arith.constant 23 : index
    %85 = memref.load %arg2[%c23] : memref<36xf32, #tpu.memory_space<smem>>
    %86 = vector.broadcast %85 : f32 to vector<2x256xf32>
    %87 = arith.addf %81, %86 : vector<2x256xf32>
    %88 = arith.maximumf %76, %84 : vector<2x256xf32>
    %89 = arith.maximumf %77, %87 : vector<2x256xf32>
    %c241_i32 = arith.constant 241 : i32
    %90 = tpu.dynamic_rotate %23 by %c241_i32 dim 1 : vector<2x256xf32>, i32 -> vector<2x256xf32>
    %c6 = arith.constant 6 : index
    %c0_20 = arith.constant 0 : index
    %91 = vector.load %arg3[%c6, %c0_20] : memref<9x256xf32, #tpu.memory_space<vmem>>, vector<1x256xf32>
    %92 = vector.broadcast %91 : vector<1x256xf32> to vector<2x256xf32>
    %93 = arith.mulf %90, %92 : vector<2x256xf32>
    %c6_21 = arith.constant 6 : index
    %94 = memref.load %arg2[%c6_21] : memref<36xf32, #tpu.memory_space<smem>>
    %95 = vector.broadcast %94 : f32 to vector<2x256xf32>
    %96 = arith.subf %95, %93 : vector<2x256xf32>
    %c24 = arith.constant 24 : index
    %97 = memref.load %arg2[%c24] : memref<36xf32, #tpu.memory_space<smem>>
    %98 = vector.broadcast %97 : f32 to vector<2x256xf32>
    %99 = arith.addf %93, %98 : vector<2x256xf32>
    %100 = arith.maximumf %88, %96 : vector<2x256xf32>
    %101 = arith.maximumf %89, %99 : vector<2x256xf32>
    %c240_i32 = arith.constant 240 : i32
    %102 = tpu.dynamic_rotate %23 by %c240_i32 dim 1 : vector<2x256xf32>, i32 -> vector<2x256xf32>
    %c7 = arith.constant 7 : index
    %c0_22 = arith.constant 0 : index
    %103 = vector.load %arg3[%c7, %c0_22] : memref<9x256xf32, #tpu.memory_space<vmem>>, vector<1x256xf32>
    %104 = vector.broadcast %103 : vector<1x256xf32> to vector<2x256xf32>
    %105 = arith.mulf %102, %104 : vector<2x256xf32>
    %c7_23 = arith.constant 7 : index
    %106 = memref.load %arg2[%c7_23] : memref<36xf32, #tpu.memory_space<smem>>
    %107 = vector.broadcast %106 : f32 to vector<2x256xf32>
    %108 = arith.subf %107, %105 : vector<2x256xf32>
    %c25 = arith.constant 25 : index
    %109 = memref.load %arg2[%c25] : memref<36xf32, #tpu.memory_space<smem>>
    %110 = vector.broadcast %109 : f32 to vector<2x256xf32>
    %111 = arith.addf %105, %110 : vector<2x256xf32>
    %112 = arith.maximumf %100, %108 : vector<2x256xf32>
    %113 = arith.maximumf %101, %111 : vector<2x256xf32>
    %c239_i32 = arith.constant 239 : i32
    %114 = tpu.dynamic_rotate %23 by %c239_i32 dim 1 : vector<2x256xf32>, i32 -> vector<2x256xf32>
    %c8 = arith.constant 8 : index
    %c0_24 = arith.constant 0 : index
    %115 = vector.load %arg3[%c8, %c0_24] : memref<9x256xf32, #tpu.memory_space<vmem>>, vector<1x256xf32>
    %116 = vector.broadcast %115 : vector<1x256xf32> to vector<2x256xf32>
    %117 = arith.mulf %114, %116 : vector<2x256xf32>
    %c8_25 = arith.constant 8 : index
    %118 = memref.load %arg2[%c8_25] : memref<36xf32, #tpu.memory_space<smem>>
    %119 = vector.broadcast %118 : f32 to vector<2x256xf32>
    %120 = arith.subf %119, %117 : vector<2x256xf32>
    %c26 = arith.constant 26 : index
    %121 = memref.load %arg2[%c26] : memref<36xf32, #tpu.memory_space<smem>>
    %122 = vector.broadcast %121 : f32 to vector<2x256xf32>
    %123 = arith.addf %117, %122 : vector<2x256xf32>
    %124 = arith.maximumf %112, %120 : vector<2x256xf32>
    %125 = arith.maximumf %113, %123 : vector<2x256xf32>
    %c9 = arith.constant 9 : index
    %126 = memref.load %arg2[%c9] : memref<36xf32, #tpu.memory_space<smem>>
    %c17_i32_26 = arith.constant 17 : i32
    %127 = tpu.dynamic_rotate %124 by %c17_i32_26 dim 1 : vector<2x256xf32>, i32 -> vector<2x256xf32>
    %c0_27 = arith.constant 0 : index
    %c0_28 = arith.constant 0 : index
    %128 = vector.load %arg3[%c0_27, %c0_28] : memref<9x256xf32, #tpu.memory_space<vmem>>, vector<1x256xf32>
    %129 = vector.broadcast %128 : vector<1x256xf32> to vector<2x256xf32>
    %130 = arith.mulf %127, %129 : vector<2x256xf32>
    %131 = vector.broadcast %126 : f32 to vector<2x256xf32>
    %132 = arith.subf %131, %130 : vector<2x256xf32>
    %c10 = arith.constant 10 : index
    %133 = memref.load %arg2[%c10] : memref<36xf32, #tpu.memory_space<smem>>
    %c16_i32_29 = arith.constant 16 : i32
    %134 = tpu.dynamic_rotate %124 by %c16_i32_29 dim 1 : vector<2x256xf32>, i32 -> vector<2x256xf32>
    %c1_30 = arith.constant 1 : index
    %c0_31 = arith.constant 0 : index
    %135 = vector.load %arg3[%c1_30, %c0_31] : memref<9x256xf32, #tpu.memory_space<vmem>>, vector<1x256xf32>
    %136 = vector.broadcast %135 : vector<1x256xf32> to vector<2x256xf32>
    %137 = arith.mulf %134, %136 : vector<2x256xf32>
    %138 = vector.broadcast %133 : f32 to vector<2x256xf32>
    %139 = arith.subf %138, %137 : vector<2x256xf32>
    %140 = arith.maximumf %132, %139 : vector<2x256xf32>
    %c11 = arith.constant 11 : index
    %141 = memref.load %arg2[%c11] : memref<36xf32, #tpu.memory_space<smem>>
    %c15_i32_32 = arith.constant 15 : i32
    %142 = tpu.dynamic_rotate %124 by %c15_i32_32 dim 1 : vector<2x256xf32>, i32 -> vector<2x256xf32>
    %c2_33 = arith.constant 2 : index
    %c0_34 = arith.constant 0 : index
    %143 = vector.load %arg3[%c2_33, %c0_34] : memref<9x256xf32, #tpu.memory_space<vmem>>, vector<1x256xf32>
    %144 = vector.broadcast %143 : vector<1x256xf32> to vector<2x256xf32>
    %145 = arith.mulf %142, %144 : vector<2x256xf32>
    %146 = vector.broadcast %141 : f32 to vector<2x256xf32>
    %147 = arith.subf %146, %145 : vector<2x256xf32>
    %148 = arith.maximumf %140, %147 : vector<2x256xf32>
    %c12 = arith.constant 12 : index
    %149 = memref.load %arg2[%c12] : memref<36xf32, #tpu.memory_space<smem>>
    %c1_i32_35 = arith.constant 1 : i32
    %150 = tpu.dynamic_rotate %124 by %c1_i32_35 dim 1 : vector<2x256xf32>, i32 -> vector<2x256xf32>
    %c3_36 = arith.constant 3 : index
    %c0_37 = arith.constant 0 : index
    %151 = vector.load %arg3[%c3_36, %c0_37] : memref<9x256xf32, #tpu.memory_space<vmem>>, vector<1x256xf32>
    %152 = vector.broadcast %151 : vector<1x256xf32> to vector<2x256xf32>
    %153 = arith.mulf %150, %152 : vector<2x256xf32>
    %154 = vector.broadcast %149 : f32 to vector<2x256xf32>
    %155 = arith.subf %154, %153 : vector<2x256xf32>
    %156 = arith.maximumf %148, %155 : vector<2x256xf32>
    %c13 = arith.constant 13 : index
    %157 = memref.load %arg2[%c13] : memref<36xf32, #tpu.memory_space<smem>>
    %158 = vector.broadcast %157 : f32 to vector<2x256xf32>
    %159 = arith.subf %158, %124 : vector<2x256xf32>
    %160 = arith.maximumf %156, %159 : vector<2x256xf32>
    %c14 = arith.constant 14 : index
    %161 = memref.load %arg2[%c14] : memref<36xf32, #tpu.memory_space<smem>>
    %c255_i32_38 = arith.constant 255 : i32
    %162 = tpu.dynamic_rotate %124 by %c255_i32_38 dim 1 : vector<2x256xf32>, i32 -> vector<2x256xf32>
    %c5_39 = arith.constant 5 : index
    %c0_40 = arith.constant 0 : index
    %163 = vector.load %arg3[%c5_39, %c0_40] : memref<9x256xf32, #tpu.memory_space<vmem>>, vector<1x256xf32>
    %164 = vector.broadcast %163 : vector<1x256xf32> to vector<2x256xf32>
    %165 = arith.mulf %162, %164 : vector<2x256xf32>
    %166 = vector.broadcast %161 : f32 to vector<2x256xf32>
    %167 = arith.subf %166, %165 : vector<2x256xf32>
    %168 = arith.maximumf %160, %167 : vector<2x256xf32>
    %c15 = arith.constant 15 : index
    %169 = memref.load %arg2[%c15] : memref<36xf32, #tpu.memory_space<smem>>
    %c241_i32_41 = arith.constant 241 : i32
    %170 = tpu.dynamic_rotate %124 by %c241_i32_41 dim 1 : vector<2x256xf32>, i32 -> vector<2x256xf32>
    %c6_42 = arith.constant 6 : index
    %c0_43 = arith.constant 0 : index
    %171 = vector.load %arg3[%c6_42, %c0_43] : memref<9x256xf32, #tpu.memory_space<vmem>>, vector<1x256xf32>
    %172 = vector.broadcast %171 : vector<1x256xf32> to vector<2x256xf32>
    %173 = arith.mulf %170, %172 : vector<2x256xf32>
    %174 = vector.broadcast %169 : f32 to vector<2x256xf32>
    %175 = arith.subf %174, %173 : vector<2x256xf32>
    %176 = arith.maximumf %168, %175 : vector<2x256xf32>
    %c16 = arith.constant 16 : index
    %177 = memref.load %arg2[%c16] : memref<36xf32, #tpu.memory_space<smem>>
    %c240_i32_44 = arith.constant 240 : i32
    %178 = tpu.dynamic_rotate %124 by %c240_i32_44 dim 1 : vector<2x256xf32>, i32 -> vector<2x256xf32>
    %c7_45 = arith.constant 7 : index
    %c0_46 = arith.constant 0 : index
    %179 = vector.load %arg3[%c7_45, %c0_46] : memref<9x256xf32, #tpu.memory_space<vmem>>, vector<1x256xf32>
    %180 = vector.broadcast %179 : vector<1x256xf32> to vector<2x256xf32>
    %181 = arith.mulf %178, %180 : vector<2x256xf32>
    %182 = vector.broadcast %177 : f32 to vector<2x256xf32>
    %183 = arith.subf %182, %181 : vector<2x256xf32>
    %184 = arith.maximumf %176, %183 : vector<2x256xf32>
    %c17 = arith.constant 17 : index
    %185 = memref.load %arg2[%c17] : memref<36xf32, #tpu.memory_space<smem>>
    %c239_i32_47 = arith.constant 239 : i32
    %186 = tpu.dynamic_rotate %124 by %c239_i32_47 dim 1 : vector<2x256xf32>, i32 -> vector<2x256xf32>
    %c8_48 = arith.constant 8 : index
    %c0_49 = arith.constant 0 : index
    %187 = vector.load %arg3[%c8_48, %c0_49] : memref<9x256xf32, #tpu.memory_space<vmem>>, vector<1x256xf32>
    %188 = vector.broadcast %187 : vector<1x256xf32> to vector<2x256xf32>
    %189 = arith.mulf %186, %188 : vector<2x256xf32>
    %190 = vector.broadcast %185 : f32 to vector<2x256xf32>
    %191 = arith.subf %190, %189 : vector<2x256xf32>
    %192 = arith.maximumf %184, %191 : vector<2x256xf32>
    %c27 = arith.constant 27 : index
    %193 = memref.load %arg2[%c27] : memref<36xf32, #tpu.memory_space<smem>>
    %c17_i32_50 = arith.constant 17 : i32
    %194 = tpu.dynamic_rotate %125 by %c17_i32_50 dim 1 : vector<2x256xf32>, i32 -> vector<2x256xf32>
    %c0_51 = arith.constant 0 : index
    %c0_52 = arith.constant 0 : index
    %195 = vector.load %arg3[%c0_51, %c0_52] : memref<9x256xf32, #tpu.memory_space<vmem>>, vector<1x256xf32>
    %196 = vector.broadcast %195 : vector<1x256xf32> to vector<2x256xf32>
    %197 = arith.mulf %194, %196 : vector<2x256xf32>
    %198 = vector.broadcast %193 : f32 to vector<2x256xf32>
    %199 = arith.subf %198, %197 : vector<2x256xf32>
    %c28 = arith.constant 28 : index
    %200 = memref.load %arg2[%c28] : memref<36xf32, #tpu.memory_space<smem>>
    %c16_i32_53 = arith.constant 16 : i32
    %201 = tpu.dynamic_rotate %125 by %c16_i32_53 dim 1 : vector<2x256xf32>, i32 -> vector<2x256xf32>
    %c1_54 = arith.constant 1 : index
    %c0_55 = arith.constant 0 : index
    %202 = vector.load %arg3[%c1_54, %c0_55] : memref<9x256xf32, #tpu.memory_space<vmem>>, vector<1x256xf32>
    %203 = vector.broadcast %202 : vector<1x256xf32> to vector<2x256xf32>
    %204 = arith.mulf %201, %203 : vector<2x256xf32>
    %205 = vector.broadcast %200 : f32 to vector<2x256xf32>
    %206 = arith.subf %205, %204 : vector<2x256xf32>
    %207 = arith.maximumf %199, %206 : vector<2x256xf32>
    %c29 = arith.constant 29 : index
    %208 = memref.load %arg2[%c29] : memref<36xf32, #tpu.memory_space<smem>>
    %c15_i32_56 = arith.constant 15 : i32
    %209 = tpu.dynamic_rotate %125 by %c15_i32_56 dim 1 : vector<2x256xf32>, i32 -> vector<2x256xf32>
    %c2_57 = arith.constant 2 : index
    %c0_58 = arith.constant 0 : index
    %210 = vector.load %arg3[%c2_57, %c0_58] : memref<9x256xf32, #tpu.memory_space<vmem>>, vector<1x256xf32>
    %211 = vector.broadcast %210 : vector<1x256xf32> to vector<2x256xf32>
    %212 = arith.mulf %209, %211 : vector<2x256xf32>
    %213 = vector.broadcast %208 : f32 to vector<2x256xf32>
    %214 = arith.subf %213, %212 : vector<2x256xf32>
    %215 = arith.maximumf %207, %214 : vector<2x256xf32>
    %c30 = arith.constant 30 : index
    %216 = memref.load %arg2[%c30] : memref<36xf32, #tpu.memory_space<smem>>
    %c1_i32_59 = arith.constant 1 : i32
    %217 = tpu.dynamic_rotate %125 by %c1_i32_59 dim 1 : vector<2x256xf32>, i32 -> vector<2x256xf32>
    %c3_60 = arith.constant 3 : index
    %c0_61 = arith.constant 0 : index
    %218 = vector.load %arg3[%c3_60, %c0_61] : memref<9x256xf32, #tpu.memory_space<vmem>>, vector<1x256xf32>
    %219 = vector.broadcast %218 : vector<1x256xf32> to vector<2x256xf32>
    %220 = arith.mulf %217, %219 : vector<2x256xf32>
    %221 = vector.broadcast %216 : f32 to vector<2x256xf32>
    %222 = arith.subf %221, %220 : vector<2x256xf32>
    %223 = arith.maximumf %215, %222 : vector<2x256xf32>
    %c31 = arith.constant 31 : index
    %224 = memref.load %arg2[%c31] : memref<36xf32, #tpu.memory_space<smem>>
    %225 = vector.broadcast %224 : f32 to vector<2x256xf32>
    %226 = arith.subf %225, %125 : vector<2x256xf32>
    %227 = arith.maximumf %223, %226 : vector<2x256xf32>
    %c32 = arith.constant 32 : index
    %228 = memref.load %arg2[%c32] : memref<36xf32, #tpu.memory_space<smem>>
    %c255_i32_62 = arith.constant 255 : i32
    %229 = tpu.dynamic_rotate %125 by %c255_i32_62 dim 1 : vector<2x256xf32>, i32 -> vector<2x256xf32>
    %c5_63 = arith.constant 5 : index
    %c0_64 = arith.constant 0 : index
    %230 = vector.load %arg3[%c5_63, %c0_64] : memref<9x256xf32, #tpu.memory_space<vmem>>, vector<1x256xf32>
    %231 = vector.broadcast %230 : vector<1x256xf32> to vector<2x256xf32>
    %232 = arith.mulf %229, %231 : vector<2x256xf32>
    %233 = vector.broadcast %228 : f32 to vector<2x256xf32>
    %234 = arith.subf %233, %232 : vector<2x256xf32>
    %235 = arith.maximumf %227, %234 : vector<2x256xf32>
    %c33 = arith.constant 33 : index
    %236 = memref.load %arg2[%c33] : memref<36xf32, #tpu.memory_space<smem>>
    %c241_i32_65 = arith.constant 241 : i32
    %237 = tpu.dynamic_rotate %125 by %c241_i32_65 dim 1 : vector<2x256xf32>, i32 -> vector<2x256xf32>
    %c6_66 = arith.constant 6 : index
    %c0_67 = arith.constant 0 : index
    %238 = vector.load %arg3[%c6_66, %c0_67] : memref<9x256xf32, #tpu.memory_space<vmem>>, vector<1x256xf32>
    %239 = vector.broadcast %238 : vector<1x256xf32> to vector<2x256xf32>
    %240 = arith.mulf %237, %239 : vector<2x256xf32>
    %241 = vector.broadcast %236 : f32 to vector<2x256xf32>
    %242 = arith.subf %241, %240 : vector<2x256xf32>
    %243 = arith.maximumf %235, %242 : vector<2x256xf32>
    %c34 = arith.constant 34 : index
    %244 = memref.load %arg2[%c34] : memref<36xf32, #tpu.memory_space<smem>>
    %c240_i32_68 = arith.constant 240 : i32
    %245 = tpu.dynamic_rotate %125 by %c240_i32_68 dim 1 : vector<2x256xf32>, i32 -> vector<2x256xf32>
    %c7_69 = arith.constant 7 : index
    %c0_70 = arith.constant 0 : index
    %246 = vector.load %arg3[%c7_69, %c0_70] : memref<9x256xf32, #tpu.memory_space<vmem>>, vector<1x256xf32>
    %247 = vector.broadcast %246 : vector<1x256xf32> to vector<2x256xf32>
    %248 = arith.mulf %245, %247 : vector<2x256xf32>
    %249 = vector.broadcast %244 : f32 to vector<2x256xf32>
    %250 = arith.subf %249, %248 : vector<2x256xf32>
    %251 = arith.maximumf %243, %250 : vector<2x256xf32>
    %c35 = arith.constant 35 : index
    %252 = memref.load %arg2[%c35] : memref<36xf32, #tpu.memory_space<smem>>
    %c239_i32_71 = arith.constant 239 : i32
    %253 = tpu.dynamic_rotate %125 by %c239_i32_71 dim 1 : vector<2x256xf32>, i32 -> vector<2x256xf32>
    %c8_72 = arith.constant 8 : index
    %c0_73 = arith.constant 0 : index
    %254 = vector.load %arg3[%c8_72, %c0_73] : memref<9x256xf32, #tpu.memory_space<vmem>>, vector<1x256xf32>
    %255 = vector.broadcast %254 : vector<1x256xf32> to vector<2x256xf32>
    %256 = arith.mulf %253, %255 : vector<2x256xf32>
    %257 = vector.broadcast %252 : f32 to vector<2x256xf32>
    %258 = arith.subf %257, %256 : vector<2x256xf32>
    %259 = arith.maximumf %251, %258 : vector<2x256xf32>
    %cst_74 = arith.constant 0.000000e+00 : f32
    %260 = vector.broadcast %cst_74 : f32 to vector<2x256xf32>
    %261 = arith.subf %260, %259 : vector<2x256xf32>
    %262 = arith.subf %23, %192 : vector<2x256xf32>
    %c0_75 = arith.constant 0 : index
    %c0_76 = arith.constant 0 : index
    %263 = vector.load %arg5[%c0_75, %c0_76] : memref<2x1024xf32, #tpu.memory_space<vmem>>, vector<2x256xf32>
    tpu.vector_store %arg5[%c0_75, %c0_76], %262 {strides = array<i32>} : memref<2x1024xf32, #tpu.memory_space<vmem>>, vector<2x256xf32>,
    %264 = arith.subf %261, %23 : vector<2x256xf32>
    %c0_77 = arith.constant 0 : index
    %c256_78 = arith.constant 256 : index
    %265 = vector.load %arg5[%c0_77, %c256_78] : memref<2x1024xf32, #tpu.memory_space<vmem>>, vector<2x256xf32>
    tpu.vector_store %arg5[%c0_77, %c256_78], %264 {strides = array<i32>} : memref<2x1024xf32, #tpu.memory_space<vmem>>, vector<2x256xf32>,
    %c0_79 = arith.constant 0 : index
    %c512_80 = arith.constant 512 : index
    %266 = vector.load %arg5[%c0_79, %c512_80] : memref<2x1024xf32, #tpu.memory_space<vmem>>, vector<2x256xf32>
    tpu.vector_store %arg5[%c0_79, %c512_80], %192 {strides = array<i32>} : memref<2x1024xf32, #tpu.memory_space<vmem>>, vector<2x256xf32>,
    %c0_81 = arith.constant 0 : index
    %c768_82 = arith.constant 768 : index
    %267 = vector.load %arg5[%c0_81, %c768_82] : memref<2x1024xf32, #tpu.memory_space<vmem>>, vector<2x256xf32>
    tpu.vector_store %arg5[%c0_81, %c768_82], %261 {strides = array<i32>} : memref<2x1024xf32, #tpu.memory_space<vmem>>, vector<2x256xf32>,
    return
  }
  func.func @transform_0(%arg0: i32) -> i32 {
    %c0_i32 = arith.constant 0 : i32
    %c0_i32_0 = arith.constant 0 : i32
    return %c0_i32 : i32
  }
  func.func @transform_1(%arg0: i32) -> i32 {
    %c0_i32 = arith.constant 0 : i32
    %c0_i32_0 = arith.constant 0 : i32
    return %c0_i32 : i32
  }
  func.func @transform_2(%arg0: i32) -> (i32, i32) {
    %c0_i32 = arith.constant 0 : i32
    %c0_i32_0 = arith.constant 0 : i32
    %c0_i32_1 = arith.constant 0 : i32
    return %c0_i32, %c0_i32_0 : i32, i32
  }
  func.func @transform_3(%arg0: i32) -> (i32, i32) {
    %c0_i32 = arith.constant 0 : i32
    %c0_i32_0 = arith.constant 0 : i32
    return %arg0, %c0_i32 : i32, i32
  }
  func.func @transform_4(%arg0: i32) -> (i32, i32) {
    %c0_i32 = arith.constant 0 : i32
    %c0_i32_0 = arith.constant 0 : i32
    return %arg0, %c0_i32 : i32, i32
  }
}

</mosaic_0001>

<bundles_post_ra>
// kernel: tpu_custom_call.1
= control target key start
LH: loop header
LB: loop body
LE: loop exit
PB: predicated region body
PF: predicated region fallthrough
CT: control target
= control target key end

     0   :  { %9 = vsyncpa [#allocation5], 0  ;;  %s1432_s0 = inlined_call_operand.hbm [shape: f32[5], index: 0, kind: input, shape index: {}]   ;;  %s1433_s1 = inlined_call_operand.vmem [shape: f32[36], index: 1, kind: input, shape index: {}]   ;;  %s1434_s2 = inlined_call_operand.hbm [shape: f32[9,256], index: 2, kind: input, shape index: {}]   ;;  %s1435_s3 = inlined_call_operand.hbm [shape: f32[2,1024], index: 3, kind: input, shape index: {}]   ;;  %s1436_s4 = inlined_call_operand.hbm [shape: f32[2,1024], index: 4, kind: output, shape index: {}]  }
   0x1   :  { %10 = vsyncpa [#allocation6], 0 }
   0x2   :  { %11 = vsyncpa [#allocation3], 0 }
   0x3   :  { %12 = vsyncpa [#allocation10], 0 }
   0x4   :  { %13 = vsyncpa [#allocation4], 0  ;;  %s28_s17 = sshll.u32 %s1433_s1, 4  ;;  %s841_s18 = smov [#allocation2]   ;;  %s29_s17 = int_to_ptr.vmem [resolvable:$true] %s28_s17 }
   0x5   :  { %21 = dma.hbm_to_smem %s1432_s0, 16, %s841_s18, [#allocation5]  }
   0x6   :  { %s759_s21 = scalar_lea.vmem %s29_s17, 16  ;;  %p764_p1 = scmp.lt.s32.totalorder %s29_s17, %s29_s17 }
   0x7   :  { %p760_p0 = scmp.ne.s32.totalorder %s29_s17, %s759_s21  ;;  %p765_p2 = scmp.lt.s32.totalorder %s759_s21, %s759_s21 }
   0x9   :  { %p766_p3 = por %p765_p2, %p764_p1 }
   0xb   :  { %p767_p4 = pnand %p766_p3, %p760_p0 }
   0xd   :  { %770 = shalt.err (!%p767_p4)
}
   0xe   :  { %s842_s22 = smov [#allocation7]   ;;  %s843_s23 = smov [#allocation8]  }
   0xf   :  { %31 = dma.vmem_to_smem %s29_s17, 16, %s842_s22, [#allocation6]  }
  0x10   :  { %s37_s24 = sshll.u32 %s843_s23, 4  ;;  %s38_s24 = int_to_ptr.vmem [resolvable:$true] %s37_s24 }
  0x11   :  { %s779_s25 = scalar_lea.vmem %s38_s24, 512  ;;  %p784_p6 = scmp.lt.s32.totalorder %s38_s24, %s38_s24 }
  0x12   :  { %p780_p5 = scmp.ne.s32.totalorder %s38_s24, %s779_s25  ;;  %p785_p7 = scmp.lt.s32.totalorder %s779_s25, %s779_s25 }
  0x14   :  { %p786_p8 = por %p785_p7, %p784_p6 }
  0x16   :  { %p787_p9 = pnand %p786_p8, %p780_p5 }
  0x18   :  { %790 = shalt.err (!%p787_p9)
}
  0x19   :  { %s844_s0 = smov 256   ;;  %s845_s1 = smov 16  }
  0x1a   :  { %43 = dma.hbm_to_vmem [thread:$0]  %s1434_s2, 512, %s38_s24, [#allocation3], %s844_s0, %s844_s0, %s845_s1  }
  0x1b   :  { %s846_s28 = smov [#allocation9]  }
  0x1c   :  { %s50_s29 = sshll.u32 %s846_s28, 4  ;;  %s51_s29 = int_to_ptr.vmem [resolvable:$true] %s50_s29 }
  0x1d   :  { %s799_s30 = scalar_lea.vmem %s51_s29, 256  ;;  %p804_p11 = scmp.lt.s32.totalorder %s51_s29, %s51_s29 }
  0x1e   :  { %p800_p10 = scmp.ne.s32.totalorder %s51_s29, %s799_s30  ;;  %p805_p12 = scmp.lt.s32.totalorder %s799_s30, %s799_s30 }
  0x20   :  { %p806_p13 = por %p805_p12, %p804_p11 }
  0x22   :  { %p807_p0 = pnand %p806_p13, %p800_p10 }
  0x24   :  { %810 = shalt.err (!%p807_p0)
}
  0x25   :  { %53 = dma.hbm_to_vmem [thread:$0]  %s1435_s3, 256, %s51_s29, [#allocation10]  }
  0x26   :  { %831 = dma.done.wait [#allocation5], 16  }
  0x27   :  { %832 = vsyncadd [#allocation5], 4294967280 }
  0x28   :  { %833 = dma.done.wait [#allocation6], 16  }
  0x29   :  { %834 = vsyncadd [#allocation6], 4294967280 }
  0x2a   :  { %835 = dma.done.wait [#allocation3], 512  }
  0x2b   :  { %836 = vsyncadd [#allocation3], 4294966784 }
  0x2c   :  { %837 = dma.done.wait [#allocation10], 256  }
  0x2d   :  { %838 = vsyncadd [#allocation10], 4294967040 }
  0x2e   :  { %66 = sfence }
  0x2f   :  { %s68_s2 = sld [smem:[#allocation2]]  ;;  %v67_v0 = vld [vmem:[#allocation9] sm:$0xf]  ;;  %v74_v2 = vld [vmem:[#allocation9 + $0x4] sm:$0xf]  ;;  %v94_v8 = vlaneseq  ;;  %s848_s3 = smov 17  }
  0x30   :  { %s694_s7 = sld [smem:[#allocation2 + $0x4]]  ;;  %v79_v5 = vld [vmem:[#allocation9 + $0x8] sm:$0xf]  ;;  %v847_v6 = vmov 1983009808   ;;  %s849_s11 = smov 15  }
  0x31   :  { %s695_s8 = sld [smem:[#allocation2 + $0x1]]  ;;  %v92_v7 = vunpack.c.l.s4 %v847_v6  ;;  %v84_v10 = vld [vmem:[#allocation9 + $0xc] sm:$0xf]  ;;  %v95_v19 = vshrl.u32 %v94_v8, 7  ;;  %s850_s12 = smov 1   ;;  %v950_v26 = vand.u32 127, %v94_v8 }
  0x32   :  { %s696_s9 = sld [smem:[#allocation2 + $0x2]]  ;;  %s851_s13 = smov 127   ;;  %v140_v31 = vld [vmem:[#allocation8 + $0x1] ss:$8 sm:$0x3] }
  0x33   :  { %s697_s10 = sld [smem:[#allocation2 + $0x3]]  ;;  %v93_v18 = vunpack.c.0.s8 %v92_v7  ;;  %s852_s14 = smov 113   ;;  %v954_v27 = vsub.s32 0, %v95_v19  ;;  %v956_v28 = vsub.s32 1, %v95_v19  ;;  %vm136_vm0 = vcmp.lt.s32.totalorder %v950_v26, 16 }
  0x34   :  { %s853_s15 = smov 112   ;;  %s854_s16 = smov 111   ;;  %v174_v32 = vld [vmem:[#allocation8 + $0x2] ss:$8 sm:$0x3]  ;;  %vm170_vm1 = vcmp.lt.s32.totalorder %v950_v26, 15 }
  0x35   :  { %v69_v1 = vstv %s68_s2  ;;  %v894_v22 = vsub.s32 %v93_v18, %v95_v19  ;;  %s938_s17 = sld [smem:[#allocation7 + $0x1]]  ;;  %v971_v34 = vrot.slane %v140_v31, %v954_v27  ;;  %v974_v35 = vrot.slane %v140_v31, %v956_v28  ;;  %v208_v37 = vld [vmem:[#allocation8 + $0x3] ss:$8 sm:$0x3] }
  0x36   :  { %v70_v3 = vmul.f32 %v69_v1, %v67_v0  ;;  %v72_v4 = vstv %s694_s7  ;;  %s940_s18 = sld [smem:[#allocation7 + $0x4]]  ;;  %v983_v42 = vrot.slane %v174_v32, %v954_v27  ;;  %v110_v43 = vld [vmem:[#allocation8] ss:$8 sm:$0x3]  ;;  %v987_v45 = vrot.slane %v174_v32, %v956_v28 }
  0x37   :  { %v76_v9 = vstv %s695_s8  ;;  %s942_s19 = sld [smem:[#allocation7 + $0x13]]  ;;  %vm204_vm2 = vcmp.lt.s32.totalorder %v950_v26, 1  ;;  %v993_v48 = vrot.slane %v208_v37, %v954_v27  ;;  %v996_v49 = vrot.slane %v208_v37, %v956_v28  ;;  %v274_v51 = vld [vmem:[#allocation8 + $0x5] ss:$8 sm:$0x3] }
  0x38   :  { %v73_v11 = vadd.f32 %v72_v4, %v70_v3  ;;  %v77_v12 = vmul.f32 %v76_v9, %v74_v2  ;;  %v81_v13 = vstv %s696_s9  ;;  %s944_s20 = sld [smem:[#allocation7 + $0x16]]  ;;  %vm107_vm3 = vcmp.lt.s32.totalorder %v950_v26, 17  ;;  %v308_v61 = vld [vmem:[#allocation8 + $0x6] ss:$8 sm:$0x3] }
  0x39   :  { %v82_v14 = vmul.f32 %v81_v13, %v79_v5  ;;  %v86_v15 = vstv %s697_s10  ;;  %s946_s21 = sld [smem:[#allocation7 + $0x2]]  ;;  %v1005_v54 = vrot.slane %v110_v43, %v954_v27  ;;  %v1008_v55 = vrot.slane %v110_v43, %v956_v28 }
  0x3a   :  { %v78_v16 = vadd.f32 %v77_v12, %v73_v11  ;;  %v87_v17 = vmul.f32 %v86_v15, %v84_v10  ;;  %s948_s22 = sld [smem:[#allocation7 + $0x14]]  ;;  %vm270_vm4 = vcmp.lt.s32.totalorder %v950_v26, 127  ;;  %v1023_v0 = vrot.slane %v274_v51, %v954_v27 }
  0x3b   :  { %s952_s23 = sld [smem:[#allocation7 + $0x3]]  ;;  %v155_v36 = vstv %s938_s17  ;;  %v1026_v1 = vrot.slane %v274_v51, %v956_v28  ;;  %v1038_v9 = vrot.slane %v308_v61, %v954_v27  ;;  %v1045_v15 = vrot.slane %v308_v61, %v956_v28 }
  0x3c   :  { %v83_v20 = vadd.f32 %v82_v14, %v78_v16  ;;  %s958_s24 = sld [smem:[#allocation7 + $0x15]]  ;;  %v235_v33 = vstv %s940_s18  ;;  %vm304_vm5 = vcmp.lt.s32.totalorder %v950_v26, 113  ;;  %vm338_vm6 = vcmp.lt.s32.totalorder %v950_v26, 112 }
  0x3d   :  { %s962_s25 = sld [smem:[#allocation7]]  ;;  %v159_v40 = vstv %s942_s19  ;;  %vm372_vm7 = vcmp.lt.s32.totalorder %v950_v26, 111 }
  0x3e   :  { %v88_v21 = vadd.f32 %v87_v17, %v83_v20  ;;  %s964_s0 = sld [smem:[#allocation7 + $0x12]]  ;;  %v238_v38 = vstv %s944_s20 }
  0x3f   :  { %s968_s26 = sld [smem:[#allocation7 + $0x5]]  ;;  %v189_v46 = vstv %s946_s21 }
  0x40   :  { %v896_v23 = vmax.f32 %v88_v21, 0.0  ;;  %s978_s27 = sld [smem:[#allocation7 + $0x17]]  ;;  %v193_v47 = vstv %s948_s22 }
  0x41   :  { %s1000_s28 = sld [smem:[#allocation7 + $0x6]]  ;;  %v223_v52 = vstv %s952_s23  ;;  %s855_s23 = smov [#allocation11]  }
  0x42   :  { %v900_v24 = vrot.slane %v896_v23, %v894_v22  ;;  %v236_v44 = vsub.f32 %v235_v33, %v896_v23  ;;  %v239_v50 = vadd.f32 %v238_v38, %v896_v23  ;;  %v227_v53 = vstv %s958_s24  ;;  %s1064_s29 = sld [smem:[#allocation7 + $0x7]]  ;;  %s682_s24 = sshll.u32 %s855_s23, 4  ;;  %s683_s24 = int_to_ptr.vmem [resolvable:$true] %s682_s24 }
  0x43   :  { %v125_v2 = vstv %s962_s25  ;;  %s1092_s30 = sld [smem:[#allocation7 + $0x8]]  ;;  %s811_s25 = scalar_lea.vmem %s683_s24, 256 }
  0x44   :  { %132 = vrot.lane.b32.xlu1 %v900_v24, %s845_s1  ;;  %101 = vrot.lane.b32.xlu0 %v900_v24, %s848_s3  ;;  %v908_v25 = vcombine.high %v900_v24, %v900_v24  ;;  %v1015_v60 = vrot.slane %v236_v44, %v894_v22  ;;  %v129_v3 = vstv %s964_s0  ;;  %v1031_v4 = vrot.slane %v239_v50, %v894_v22  ;;  %s1096_s5 = sld [smem:[#allocation7 + $0x18]]  ;;  %p812_p1 = scmp.ne.s32.totalorder %s683_s24, %s811_s25 }
  0x45   :  { %v289_v5 = vstv %s968_s26  ;;  %s1116_s6 = sld [smem:[#allocation7 + $0x19]]  ;;  %p816_p2 = scmp.lt.s32.totalorder %s683_s24, %s683_s24 }
  0x46   :  { %v293_v8 = vstv %s978_s27  ;;  %v248_v14 = vcombine.high %v1015_v60, %v1015_v60  ;;  %s1134_s2 = sld [smem:[#allocation7 + $0x1a]]  ;;  %p817_p3 = scmp.lt.s32.totalorder %s811_s25, %s811_s25 }
  0x47   :  { %v323_v31 = vstv %s1000_s28  ;;  %s1222_s7 = sld [smem:[#allocation7 + $0x1f]] }
  0x48   :  { %166 = vrot.lane.b32.xlu0 %v900_v24, %s849_s11  ;;  %134 = vrot.lane.b32.xlu1 %v908_v25, %s845_s1  ;;  %s1224_s8 = sld [smem:[#allocation7 + $0x9]]  ;;  %p818_p4 = por %p817_p3, %p816_p2 }
  0x49   :  { %s1226_s9 = sld [smem:[#allocation7 + $0xa]] }
  0x4a   :  { %s1228_s10 = sld [smem:[#allocation7 + $0x1b]]  ;;  %p819_p5 = pnand %p818_p4, %p812_p1 }
  0x4b   :  { %s1244_s17 = sld [smem:[#allocation7 + $0xf]] }
  0x4c   :  { %200 = vrot.lane.b32.xlu0 %v900_v24, %s850_s12  ;;  %168 = vrot.lane.b32.xlu1 %v908_v25, %s849_s11  ;;  %s1247_s18 = sld [smem:[#allocation7 + $0x21]] }
  0x4d   :  { %s1293_s19 = sld [smem:[#allocation7 + $0x10]] }
  0x4e   :  { %s1314_s20 = sld [smem:[#allocation7 + $0x22]] }
  0x4f   :  { %s1322_s21 = sld [smem:[#allocation7 + $0x11]] }
  0x50   :  { %202 = vrot.lane.b32.xlu1 %v908_v25, %s850_s12  ;;  %103 = vrot.lane.b32.xlu0 %v908_v25, %s848_s3  ;;  %s1372_s22 = sld [smem:[#allocation7 + $0x23]] }
  0x54   :  { %268 = vrot.lane.b32.xlu1 %v908_v25, %s851_s13  ;;  %266 = vrot.lane.b32.xlu0 %v900_v24, %s851_s13 }
  0x58   :  { %302 = vrot.lane.b32.xlu1 %v908_v25, %s852_s14  ;;  %300 = vrot.lane.b32.xlu0 %v900_v24, %s852_s14 }
  0x5c   :  { %336 = vrot.lane.b32.xlu1 %v908_v25, %s853_s15  ;;  %334 = vrot.lane.b32.xlu0 %v900_v24, %s853_s15 }
  0x60   :  { %370 = vrot.lane.b32.xlu1 %v908_v25, %s854_s16  ;;  %368 = vrot.lane.b32.xlu0 %v900_v24, %s854_s16 }
  0xb6   :  { %v133_v29 = vpop.permute.xlu1 %132  ;;  %v960_v30 = vpop.permute.xlu0 %101 }
  0xba   :  { %v167_v39 = vpop.permute.xlu0 %166  ;;  %v135_v41 = vpop.permute.xlu1 %134 }
  0xbb   :  { %v137_v56 = vsel %vm136_vm0, %v133_v29, %v135_v41  ;;  %v138_v57 = vsel %vm136_vm0, %v135_v41, %v133_v29  ;;  %v261_v29 = vcombine.high %v1031_v4, %v1031_v4 }
  0xbc   :  { %v152_v6 = vmul.f32 %v971_v34, %v138_v57  ;;  %v153_v7 = vmul.f32 %v974_v35, %v137_v56 }
  0xbe   :  { %v201_v58 = vpop.permute.xlu0 %200  ;;  %v169_v59 = vpop.permute.xlu1 %168  ;;  %v156_v32 = vsub.f32 %v155_v36, %v152_v6  ;;  %v157_v33 = vsub.f32 %v155_v36, %v153_v7  ;;  %v160_v37 = vadd.f32 %v159_v40, %v152_v6  ;;  %v161_v38 = vadd.f32 %v159_v40, %v153_v7  ;;  %v342_v7 = vld [vmem:[#allocation8 + $0x7] ss:$8 sm:$0x3] }
  0xbf   :  { %v171_v62 = vsel %vm170_vm1, %v167_v39, %v169_v59  ;;  %v172_v63 = vsel %vm170_vm1, %v169_v59, %v167_v39 }
  0xc0   :  { %v186_v10 = vmul.f32 %v983_v42, %v172_v63  ;;  %v187_v11 = vmul.f32 %v987_v45, %v171_v62 }
  0xc2   :  { %v203_v12 = vpop.permute.xlu1 %202  ;;  %v104_v13 = vpop.permute.xlu0 %103  ;;  %v191_v39 = vsub.f32 %v189_v46, %v187_v11  ;;  %v194_v40 = vadd.f32 %v193_v47, %v186_v10 }
  0xc3   :  { %v205_v16 = vsel %vm204_vm2, %v201_v58, %v203_v12  ;;  %v206_v17 = vsel %vm204_vm2, %v203_v12, %v201_v58  ;;  %v108_v18 = vsel %vm107_vm3, %v960_v30, %v104_v13  ;;  %v109_v19 = vsel %vm107_vm3, %v104_v13, %v960_v30 }
  0xc4   :  { %v122_v20 = vmul.f32 %v1005_v54, %v109_v19  ;;  %v123_v21 = vmul.f32 %v1008_v55, %v108_v18  ;;  %v190_v30 = vsub.f32 %v189_v46, %v186_v10  ;;  %v220_v41 = vmul.f32 %v993_v48, %v206_v17 }
  0xc5   :  { %v221_v43 = vmul.f32 %v996_v49, %v205_v16  ;;  %v195_v58 = vadd.f32 %v193_v47, %v187_v11 }
  0xc6   :  { %v269_v44 = vpop.permute.xlu1 %268  ;;  %v267_v50 = vpop.permute.xlu0 %266  ;;  %v126_v51 = vsub.f32 %v125_v2, %v122_v20  ;;  %v127_v56 = vsub.f32 %v125_v2, %v123_v21  ;;  %v130_v36 = vadd.f32 %v129_v3, %v122_v20  ;;  %v131_v57 = vadd.f32 %v129_v3, %v123_v21 }
  0xc7   :  { %v271_v59 = vsel %vm270_vm4, %v267_v50, %v269_v44  ;;  %v272_v46 = vsel %vm270_vm4, %v269_v44, %v267_v50  ;;  %v224_v2 = vsub.f32 %v223_v52, %v220_v41  ;;  %v225_v3 = vsub.f32 %v223_v52, %v221_v43  ;;  %v376_v44 = vld [vmem:[#allocation8 + $0x10] ss:$8 sm:$0x3] }
  0xc8   :  { %v162_v61 = vmax.f32 %v126_v51, %v156_v32  ;;  %v163_v62 = vmax.f32 %v127_v56, %v157_v33  ;;  %v164_v63 = vmax.f32 %v130_v36, %v160_v37  ;;  %v165_v6 = vmax.f32 %v131_v57, %v161_v38 }
  0xc9   :  { %v286_v47 = vmul.f32 %v1023_v0, %v271_v59  ;;  %v287_v10 = vmul.f32 %v1026_v1, %v272_v46  ;;  %v228_v19 = vadd.f32 %v227_v53, %v220_v41  ;;  %v229_v20 = vadd.f32 %v227_v53, %v221_v43 }
  0xca   :  { %v303_v11 = vpop.permute.xlu1 %302  ;;  %v301_v12 = vpop.permute.xlu0 %300  ;;  %v196_v13 = vmax.f32 %v162_v61, %v190_v30  ;;  %v197_v16 = vmax.f32 %v163_v62, %v191_v39  ;;  %v198_v17 = vmax.f32 %v164_v63, %v194_v40  ;;  %v199_v18 = vmax.f32 %v165_v6, %v195_v58 }
  0xcb   :  { %v1087_v21 = vrot.slane %v342_v7, %v954_v27  ;;  %v1090_v52 = vrot.slane %v342_v7, %v956_v28  ;;  %v357_v37 = vstv %s1064_s29  ;;  %v305_v53 = vsel %vm304_vm5, %v301_v12, %v303_v11 }
  0xcc   :  { %v230_v32 = vmax.f32 %v196_v13, %v224_v2  ;;  %v231_v33 = vmax.f32 %v197_v16, %v225_v3  ;;  %v232_v38 = vmax.f32 %v198_v17, %v228_v19  ;;  %v233_v30 = vmax.f32 %v199_v18, %v229_v20 }
  0xcd   :  { %v306_v39 = vsel %vm304_vm5, %v303_v11, %v301_v12  ;;  %v290_v56 = vsub.f32 %v289_v5, %v286_v47  ;;  %v291_v36 = vsub.f32 %v289_v5, %v287_v10  ;;  %v320_v57 = vmul.f32 %v1038_v9, %v305_v53 }
  0xce   :  { %v337_v41 = vpop.permute.xlu1 %336  ;;  %v335_v43 = vpop.permute.xlu0 %334  ;;  %v251_v50 = vmax.f32 %v230_v32, %v1015_v60  ;;  %v252_v51 = vmax.f32 %v231_v33, %v248_v14  ;;  %v321_v40 = vmul.f32 %v1045_v15, %v306_v39  ;;  %v1119_v60 = vrot.slane %v376_v44, %v954_v27 }
  0xcf   :  { %v339_v58 = vsel %vm338_vm6, %v335_v43, %v337_v41  ;;  %v340_v59 = vsel %vm338_vm6, %v337_v41, %v335_v43  ;;  %v1122_v5 = vrot.slane %v376_v44, %v956_v28  ;;  %v264_v14 = vmax.f32 %v232_v38, %v1031_v4 }
  0xd0   :  { %v296_v46 = vmax.f32 %v251_v50, %v290_v56  ;;  %v297_v61 = vmax.f32 %v252_v51, %v291_v36  ;;  %v265_v62 = vmax.f32 %v233_v30, %v261_v29  ;;  %v324_v63 = vsub.f32 %v323_v31, %v320_v57 }
  0xd1   :  { %v325_v6 = vsub.f32 %v323_v31, %v321_v40  ;;  %v354_v27 = vmul.f32 %v1087_v21, %v339_v58  ;;  %v355_v3 = vmul.f32 %v1090_v52, %v340_v59  ;;  %v391_v12 = vstv %s1092_s30 }
  0xd2   :  { %v371_v7 = vpop.permute.xlu1 %370  ;;  %v369_v2 = vpop.permute.xlu0 %368  ;;  %v330_v29 = vmax.f32 %v296_v46, %v324_v63  ;;  %v294_v31 = vadd.f32 %v293_v8, %v286_v47  ;;  %v295_v13 = vadd.f32 %v293_v8, %v287_v10  ;;  %v327_v18 = vstv %s1096_s5 }
  0xd3   :  { %v373_v28 = vsel %vm372_vm7, %v369_v2, %v371_v7  ;;  %v374_v4 = vsel %vm372_vm7, %v371_v7, %v369_v2  ;;  %v331_v11 = vmax.f32 %v297_v61, %v325_v6  ;;  %v358_v16 = vsub.f32 %v357_v37, %v354_v27 }
  0xd4   :  { %v359_v17 = vsub.f32 %v357_v37, %v355_v3  ;;  %v388_v19 = vmul.f32 %v1119_v60, %v373_v28  ;;  %v389_v20 = vmul.f32 %v1122_v5, %v374_v4  ;;  %v298_v32 = vmax.f32 %v264_v14, %v294_v31 }
  0xd5   :  { %v299_v33 = vmax.f32 %v265_v62, %v295_v13  ;;  %v364_v38 = vmax.f32 %v330_v29, %v358_v16  ;;  %v328_v41 = vadd.f32 %v327_v18, %v320_v57  ;;  %v361_v43 = vstv %s1116_s6 }
  0xd6   :  { %v365_v30 = vmax.f32 %v331_v11, %v359_v17  ;;  %v392_v53 = vsub.f32 %v391_v12, %v388_v19  ;;  %v393_v39 = vsub.f32 %v391_v12, %v389_v20  ;;  %v329_v44 = vadd.f32 %v327_v18, %v321_v40 }
  0xd7   :  { %v332_v10 = vmax.f32 %v298_v32, %v328_v41  ;;  %v395_v37 = vstv %s1134_s2  ;;  %v362_v51 = vadd.f32 %v361_v43, %v354_v27  ;;  %v363_v56 = vadd.f32 %v361_v43, %v355_v3 }
  0xd8   :  { %v1149_v47 = vmax.f32 %v364_v38, %v392_v53  ;;  %v1151_v8 = vmax.f32 %v365_v30, %v393_v39  ;;  %v333_v50 = vmax.f32 %v299_v33, %v329_v44  ;;  %v396_v36 = vadd.f32 %v395_v37, %v388_v19 }
  0xd9   :  { %v397_v58 = vadd.f32 %v395_v37, %v389_v20  ;;  %v366_v57 = vmax.f32 %v332_v10, %v362_v51  ;;  %v573_v13 = vstv %s1222_s7  ;;  %v411_v16 = vstv %s1224_s8 }
  0xda   :  { %405 = vrot.lane.b32.xlu1 %v1151_v8, %s848_s3  ;;  %403 = vrot.lane.b32.xlu0 %v1149_v47, %s848_s3  ;;  %v367_v59 = vmax.f32 %v333_v50, %v363_v56  ;;  %v423_v17 = vstv %s1226_s9  ;;  %v527_v18 = vstv %s1228_s10 }
  0xdb   :  { %v1162_v40 = vmax.f32 %v366_v57, %v396_v36 }
  0xdc   :  { %v1164_v46 = vmax.f32 %v367_v59, %v397_v58 }
  0xdd   :  { %v1259_v38 = vsub.f32 %v573_v13, %v1162_v40 }
  0xde   :  { %417 = vrot.lane.b32.xlu1 %v1151_v8, %s845_s1  ;;  %415 = vrot.lane.b32.xlu0 %v1149_v47, %s845_s1  ;;  %v1265_v41 = vsub.f32 %v573_v13, %v1164_v46 }
  0xe2   :  { %521 = vrot.lane.b32.xlu1 %v1164_v46, %s848_s3  ;;  %519 = vrot.lane.b32.xlu0 %v1162_v40, %s848_s3  ;;  %s1230_s3 = sld [smem:[#allocation7 + $0x1c]] }
  0xe6   :  { %533 = vrot.lane.b32.xlu1 %v1164_v46, %s845_s1  ;;  %531 = vrot.lane.b32.xlu0 %v1162_v40, %s845_s1  ;;  %s719_s1 = sld [smem:[#allocation7 + $0xd]] }
  0xe8   :  { %v539_v30 = vstv %s1230_s3 }
  0xea   :  { %431 = vrot.lane.b32.xlu1 %v1151_v8, %s849_s11  ;;  %429 = vrot.lane.b32.xlu0 %v1149_v47, %s849_s11 }
  0xec   :  { %v457_v31 = vstv %s719_s1 }
  0xed   :  { %v1253_v32 = vsub.f32 %v457_v31, %v1151_v8  ;;  %v1256_v33 = vsub.f32 %v457_v31, %v1149_v47 }
  0xee   :  { %547 = vrot.lane.b32.xlu1 %v1164_v46, %s849_s11  ;;  %545 = vrot.lane.b32.xlu0 %v1162_v40, %s849_s11  ;;  %s1232_s11 = sld [smem:[#allocation7 + $0xb]] }
  0xf2   :  { %445 = vrot.lane.b32.xlu1 %v1151_v8, %s850_s12  ;;  %443 = vrot.lane.b32.xlu0 %v1149_v47, %s850_s12 }
  0xf4   :  { %v437_v53 = vstv %s1232_s11 }
  0xf6   :  { %561 = vrot.lane.b32.xlu1 %v1164_v46, %s850_s12  ;;  %559 = vrot.lane.b32.xlu0 %v1162_v40, %s850_s12  ;;  %s1234_s12 = sld [smem:[#allocation7 + $0x1d]] }
  0xfa   :  { %465 = vrot.lane.b32.xlu1 %v1151_v8, %s851_s13  ;;  %463 = vrot.lane.b32.xlu0 %v1149_v47, %s851_s13 }
  0xfc   :  { %v553_v39 = vstv %s1234_s12 }
  0xfe   :  { %581 = vrot.lane.b32.xlu1 %v1164_v46, %s851_s13  ;;  %579 = vrot.lane.b32.xlu0 %v1162_v40, %s851_s13  ;;  %s1236_s13 = sld [smem:[#allocation7 + $0xc]] }
 0x102   :  { %479 = vrot.lane.b32.xlu1 %v1151_v8, %s852_s14  ;;  %477 = vrot.lane.b32.xlu0 %v1149_v47, %s852_s14 }
 0x106   :  { %595 = vrot.lane.b32.xlu1 %v1164_v46, %s852_s14  ;;  %593 = vrot.lane.b32.xlu0 %v1162_v40, %s852_s14  ;;  %s1238_s14 = sld [smem:[#allocation7 + $0x1e]] }
 0x10a   :  { %493 = vrot.lane.b32.xlu1 %v1151_v8, %s853_s15  ;;  %491 = vrot.lane.b32.xlu0 %v1149_v47, %s853_s15 }
 0x10c   :  { %v567_v37 = vstv %s1238_s14 }
 0x10e   :  { %609 = vrot.lane.b32.xlu1 %v1164_v46, %s853_s15  ;;  %607 = vrot.lane.b32.xlu0 %v1162_v40, %s853_s15  ;;  %s1240_s15 = sld [smem:[#allocation7 + $0xe]] }
 0x112   :  { %507 = vrot.lane.b32.xlu1 %v1151_v8, %s854_s16  ;;  %505 = vrot.lane.b32.xlu0 %v1149_v47, %s854_s16  ;;  %v451_v8 = vstv %s1236_s13 }
 0x114   :  { %v471_v50 = vstv %s1240_s15 }
 0x116   :  { %623 = vrot.lane.b32.xlu1 %v1164_v46, %s854_s16  ;;  %621 = vrot.lane.b32.xlu0 %v1162_v40, %s854_s16  ;;  %s1242_s16 = sld [smem:[#allocation7 + $0x20]]  ;;  %v485_v40 = vstv %s1244_s17 }
 0x11c   :  { %v587_v51 = vstv %s1242_s16 }
 0x14c   :  { %v406_v61 = vpop.permute.xlu1 %405  ;;  %v404_v14 = vpop.permute.xlu0 %403 }
 0x14d   :  { %v408_v43 = vsel %vm107_vm3, %v406_v61, %v404_v14  ;;  %v407_v10 = vsel %vm107_vm3, %v404_v14, %v406_v61 }
 0x14e   :  { %v409_v46 = vmul.f32 %v408_v43, %v1005_v54 }
 0x150   :  { %v418_v62 = vpop.permute.xlu1 %417  ;;  %v416_v63 = vpop.permute.xlu0 %415 }
 0x151   :  { %v419_v44 = vsel %vm136_vm0, %v416_v63, %v418_v62  ;;  %v420_v47 = vsel %vm136_vm0, %v418_v62, %v416_v63  ;;  %v410_v63 = vmul.f32 %v407_v10, %v1008_v55 }
 0x152   :  { %v421_v61 = vmul.f32 %v420_v47, %v971_v34  ;;  %v422_v14 = vmul.f32 %v419_v44, %v974_v35 }
 0x154   :  { %v522_v6 = vpop.permute.xlu1 %521  ;;  %v520_v7 = vpop.permute.xlu0 %519 }
 0x158   :  { %v534_v2 = vpop.permute.xlu1 %533  ;;  %v532_v27 = vpop.permute.xlu0 %531 }
 0x159   :  { %v535_v56 = vsel %vm136_vm0, %v532_v27, %v534_v2  ;;  %v536_v36 = vsel %vm136_vm0, %v534_v2, %v532_v27  ;;  %v523_v2 = vsel %vm107_vm3, %v520_v7, %v522_v6  ;;  %v524_v27 = vsel %vm107_vm3, %v522_v6, %v520_v7 }
 0x15a   :  { %v537_v13 = vmul.f32 %v536_v36, %v971_v34  ;;  %v538_v43 = vmul.f32 %v535_v56, %v974_v35  ;;  %v412_v36 = vsub.f32 %v411_v16, %v409_v46  ;;  %v424_v35 = vsub.f32 %v423_v17, %v421_v61 }
 0x15b   :  { %v425_v56 = vsub.f32 %v423_v17, %v422_v14 }
 0x15c   :  { %v432_v3 = vpop.permute.xlu1 %431  ;;  %v430_v28 = vpop.permute.xlu0 %429  ;;  %v541_v17 = vsub.f32 %v539_v30, %v538_v43 }
 0x15d   :  { %v434_v58 = vsel %vm170_vm1, %v432_v3, %v430_v28  ;;  %v433_v62 = vsel %vm170_vm1, %v430_v28, %v432_v3 }
 0x15e   :  { %v435_v44 = vmul.f32 %v434_v58, %v983_v42  ;;  %v436_v28 = vmul.f32 %v433_v62, %v987_v45  ;;  %v525_v58 = vmul.f32 %v524_v27, %v1005_v54  ;;  %v526_v62 = vmul.f32 %v523_v2, %v1008_v55 }
 0x15f   :  { %v540_v55 = vsub.f32 %v539_v30, %v537_v13 }
 0x160   :  { %v548_v4 = vpop.permute.xlu1 %547  ;;  %v546_v29 = vpop.permute.xlu0 %545  ;;  %v438_v46 = vsub.f32 %v437_v53, %v435_v44  ;;  %v439_v61 = vsub.f32 %v437_v53, %v436_v28  ;;  %v528_v27 = vsub.f32 %v527_v18, %v525_v58  ;;  %v513_v58 = vstv %s1322_s21 }
 0x161   :  { %v550_v3 = vsel %vm170_vm1, %v548_v4, %v546_v29  ;;  %v549_v47 = vsel %vm170_vm1, %v546_v29, %v548_v4 }
 0x162   :  { %v551_v31 = vmul.f32 %v550_v3, %v983_v42  ;;  %v552_v54 = vmul.f32 %v549_v47, %v987_v45  ;;  %v529_v3 = vsub.f32 %v527_v18, %v526_v62 }
 0x164   :  { %v446_v11 = vpop.permute.xlu1 %445  ;;  %v444_v12 = vpop.permute.xlu0 %443  ;;  %v554_v13 = vsub.f32 %v553_v39, %v551_v31  ;;  %v555_v30 = vsub.f32 %v553_v39, %v552_v54  ;;  %v543_v44 = vmax.f32 %v529_v3, %v541_v17 }
 0x165   :  { %v447_v10 = vsel %vm204_vm2, %v444_v12, %v446_v11  ;;  %v448_v6 = vsel %vm204_vm2, %v446_v11, %v444_v12  ;;  %v413_v11 = vsub.f32 %v411_v16, %v410_v63  ;;  %v499_v63 = vstv %s1293_s19 }
 0x166   :  { %v449_v12 = vmul.f32 %v448_v6, %v993_v48  ;;  %v450_v42 = vmul.f32 %v447_v10, %v996_v49  ;;  %v557_v62 = vmax.f32 %v543_v44, %v555_v30 }
 0x167   :  { %v427_v45 = vmax.f32 %v413_v11, %v425_v56  ;;  %v615_v56 = vstv %s1314_s20 }
 0x168   :  { %v562_v19 = vpop.permute.xlu1 %561  ;;  %v560_v20 = vpop.permute.xlu0 %559  ;;  %v452_v53 = vsub.f32 %v451_v8, %v449_v12  ;;  %v453_v43 = vsub.f32 %v451_v8, %v450_v42 }
 0x169   :  { %v563_v4 = vsel %vm204_vm2, %v560_v20, %v562_v19  ;;  %v564_v29 = vsel %vm204_vm2, %v562_v19, %v560_v20  ;;  %v426_v19 = vmax.f32 %v412_v36, %v424_v35  ;;  %v441_v47 = vmax.f32 %v427_v45, %v439_v61 }
 0x16a   :  { %v565_v20 = vmul.f32 %v564_v29, %v993_v48  ;;  %v566_v16 = vmul.f32 %v563_v4, %v996_v49  ;;  %v542_v49 = vmax.f32 %v528_v27, %v540_v55 }
 0x16b   :  { %v440_v28 = vmax.f32 %v426_v19, %v438_v46  ;;  %v455_v29 = vmax.f32 %v441_v47, %v453_v43 }
 0x16c   :  { %v1285_v57 = vpop.permute.xlu1 %465  ;;  %v464_v59 = vpop.permute.xlu0 %463  ;;  %v568_v18 = vsub.f32 %v567_v37, %v565_v20  ;;  %v569_v31 = vsub.f32 %v567_v37, %v566_v16  ;;  %v556_v36 = vmax.f32 %v542_v49, %v554_v13 }
 0x16d   :  { %v467_v48 = vsel %vm270_vm4, %v464_v59, %v1285_v57  ;;  %v468_v39 = vsel %vm270_vm4, %v1285_v57, %v464_v59  ;;  %v454_v4 = vmax.f32 %v440_v28, %v452_v53  ;;  %v461_v19 = vmax.f32 %v455_v29, %v1253_v32 }
 0x16e   :  { %v469_v35 = vmul.f32 %v467_v48, %v1023_v0  ;;  %v470_v37 = vmul.f32 %v468_v39, %v1026_v1  ;;  %v570_v55 = vmax.f32 %v556_v36, %v568_v18  ;;  %v571_v17 = vmax.f32 %v557_v62, %v569_v31 }
 0x16f   :  { %v460_v27 = vmax.f32 %v454_v4, %v1256_v33  ;;  %v1437_v39 = vstv %s1247_s18 }
 0x170   :  { %v582_v7 = vpop.permute.xlu1 %581  ;;  %v580_v34 = vpop.permute.xlu0 %579  ;;  %v473_v3 = vsub.f32 %v471_v50, %v470_v37  ;;  %v576_v48 = vmax.f32 %v570_v55, %v1259_v38  ;;  %v577_v49 = vmax.f32 %v571_v17, %v1265_v41 }
 0x171   :  { %v583_v57 = vsel %vm270_vm4, %v580_v34, %v582_v7  ;;  %v584_v59 = vsel %vm270_vm4, %v582_v7, %v580_v34 }
 0x172   :  { %v585_v20 = vmul.f32 %v583_v57, %v1023_v0  ;;  %v586_v16 = vmul.f32 %v584_v59, %v1026_v1 }
 0x174   :  { %v480_v14 = vpop.permute.xlu1 %479  ;;  %v478_v2 = vpop.permute.xlu0 %477  ;;  %v588_v28 = vsub.f32 %v587_v51, %v585_v20 }
 0x175   :  { %v481_v8 = vsel %vm304_vm5, %v478_v2, %v480_v14  ;;  %v482_v11 = vsel %vm304_vm5, %v480_v14, %v478_v2  ;;  %v472_v14 = vsub.f32 %v471_v50, %v469_v35 }
 0x176   :  { %v483_v54 = vmul.f32 %v481_v8, %v1038_v9  ;;  %v484_v2 = vmul.f32 %v482_v11, %v1045_v15  ;;  %v1438_v8 = vmov %v1437_v39  ;;  %v590_v4 = vmax.f32 %v576_v48, %v588_v28 }
 0x177   :  { %v474_v50 = vmax.f32 %v460_v27, %v472_v14 }
 0x178   :  { %v596_v10 = vpop.permute.xlu1 %595  ;;  %v594_v6 = vpop.permute.xlu0 %593  ;;  %v486_v13 = vsub.f32 %v485_v40, %v483_v54  ;;  %v487_v44 = vsub.f32 %v485_v40, %v484_v2 }
 0x179   :  { %v597_v7 = vsel %vm304_vm5, %v594_v6, %v596_v10  ;;  %v598_v34 = vsel %vm304_vm5, %v596_v10, %v594_v6  ;;  %v475_v10 = vmax.f32 %v461_v19, %v473_v3 }
 0x17a   :  { %v599_v0 = vmul.f32 %v597_v7, %v1038_v9  ;;  %v600_v1 = vmul.f32 %v598_v34, %v1045_v15  ;;  %v589_v9 = vsub.f32 %v587_v51, %v586_v16  ;;  %v488_v6 = vmax.f32 %v474_v50, %v486_v13 }
 0x17b   :  { %v489_v35 = vmax.f32 %v475_v10, %v487_v44 }
 0x17c   :  { %v494_v12 = vpop.permute.xlu1 %493  ;;  %v492_v42 = vpop.permute.xlu0 %491  ;;  %v602_v40 = vsub.f32 %v1437_v39, %v599_v0  ;;  %v603_v36 = vsub.f32 %v1438_v8, %v600_v1  ;;  %v591_v29 = vmax.f32 %v577_v49, %v589_v9 }
 0x17d   :  { %v495_v46 = vsel %vm338_vm6, %v492_v42, %v494_v12  ;;  %v496_v61 = vsel %vm338_vm6, %v494_v12, %v492_v42 }
 0x17e   :  { %v497_v45 = vmul.f32 %v495_v46, %v1087_v21  ;;  %v498_v30 = vmul.f32 %v496_v61, %v1090_v52  ;;  %v604_v17 = vmax.f32 %v590_v4, %v602_v40  ;;  %v605_v46 = vmax.f32 %v591_v29, %v603_v36 }
 0x180   :  { %v610_v53 = vpop.permute.xlu1 %609  ;;  %v608_v32 = vpop.permute.xlu0 %607  ;;  %v500_v15 = vsub.f32 %v499_v63, %v497_v45  ;;  %v501_v18 = vsub.f32 %v499_v63, %v498_v30 }
 0x181   :  { %v611_v43 = vsel %vm338_vm6, %v608_v32, %v610_v53  ;;  %v612_v33 = vsel %vm338_vm6, %v610_v53, %v608_v32 }
 0x182   :  { %v613_v47 = vmul.f32 %v611_v43, %v1087_v21  ;;  %v614_v31 = vmul.f32 %v612_v33, %v1090_v52  ;;  %v629_v52 = vstv %s1372_s22  ;;  %v502_v11 = vmax.f32 %v488_v6, %v500_v15 }
 0x183   :  { %v503_v57 = vmax.f32 %v489_v35, %v501_v18 }
 0x184   :  { %v508_v38 = vpop.permute.xlu1 %507  ;;  %v506_v41 = vpop.permute.xlu0 %505  ;;  %v616_v37 = vsub.f32 %v615_v56, %v613_v47  ;;  %v617_v59 = vsub.f32 %v615_v56, %v614_v31 }
 0x185   :  { %v509_v51 = vsel %vm372_vm7, %v506_v41, %v508_v38  ;;  %v510_v21 = vsel %vm372_vm7, %v508_v38, %v506_v41 }
 0x186   :  { %v511_v62 = vmul.f32 %v509_v51, %v1119_v60  ;;  %v512_v63 = vmul.f32 %v510_v21, %v1122_v5  ;;  %v618_v19 = vmax.f32 %v604_v17, %v616_v37  ;;  %v619_v20 = vmax.f32 %v605_v46, %v617_v59 }
 0x188   :  { %v514_v54 = vsub.f32 %v513_v58, %v511_v62  ;;  %v515_v12 = vsub.f32 %v513_v58, %v512_v63  ;;  %v624_v42 = vpop.permute.xlu1 %623  ;;  %v622_v55 = vpop.permute.xlu0 %621 }
 0x189   :  { %v625_v61 = vsel %vm372_vm7, %v622_v55, %v624_v42  ;;  %v626_v14 = vsel %vm372_vm7, %v624_v42, %v622_v55 }
 0x18a   :  { %v516_v2 = vmax.f32 %v502_v11, %v514_v54  ;;  %v517_v7 = vmax.f32 %v503_v57, %v515_v12  ;;  %v627_v34 = vmul.f32 %v625_v61, %v1119_v60  ;;  %v628_v56 = vmul.f32 %v626_v14, %v1122_v5 }
 0x18c   :  { %v630_v16 = vsub.f32 %v629_v52, %v627_v34  ;;  %v631_v58 = vsub.f32 %v629_v52, %v628_v56  ;;  %v638_v45 = vcombine.low %v516_v2, %v517_v7 }
 0x18e   :  { %v632_v27 = vmax.f32 %v618_v19, %v630_v16  ;;  %v633_v3 = vmax.f32 %v619_v20, %v631_v58  ;;  %v645_v13 = vrot.slane %v638_v45, %v894_v22  ;;  %734 = vst.sshfl [vmem:[#allocation11 + $0x8] sm:$0x33 pattern:$0x76325410] %v638_v45 }
 0x190   :  { %v634_v30 = vsub.f32 0.0, %v632_v27  ;;  %v635_v53 = vsub.f32 0.0, %v633_v3  ;;  %v647_v26 = vsub.f32 %v896_v23, %v645_v13 }
 0x192   :  { %648 = vst [vmem:[#allocation11] sm:$0xf] %v647_v26  ;;  %v649_v60 = vsub.f32 %v634_v30, %v900_v24  ;;  %v650_v5 = vsub.f32 %v635_v53, %v908_v25  ;;  %v666_v32 = vcombine.low %v634_v30, %v635_v53 }
 0x194   :  { %v653_v0 = vcombine.low %v649_v60, %v650_v5  ;;  %735 = vst.sshfl [vmem:[#allocation11 + $0xc] sm:$0x33 pattern:$0x76325410] %v666_v32 }
 0x196   :  { %733 = vst.sshfl [vmem:[#allocation11 + $0x4] sm:$0x33 pattern:$0x76325410] %v653_v0 }
 0x197   :  { %822 = shalt.err (!%p819_p5)
}
 0x198   :  { %685 = dma.vmem_to_hbm [thread:$0]  %s683_s24, 256, %s1436_s4, [#allocation4]  }
 0x199   :  { %839 = dma.done.wait [#allocation4], 256  }
 0x19a   :  { %840 = vsyncadd [#allocation4], 4294967040 }
 0x19b   :  { %689 = vsyncpa [#allocation3], 1 }
 0x19c   :  { %690 = vsyncpa [#allocation10], 1 }
 0x19d   :  { %691 = vsyncpa [#allocation4], 1 }
 0x19e   :  { %692 = vsyncpa [#allocation5], 1 }
 0x19f   :  { %693 = vsyncpa [#allocation6], 1 }

</bundles_post_ra>
